<compile_context>
chip_gen: v7x
topology: tpu7x:2x2x1
jax: 0.10.0
libtpu: 0.0.40
codegen_flags: <defaults>
</compile_context>

<pallas_src>
import jax
import jax.numpy as jnp
from jax.experimental import pallas as pl
from jax.experimental.pallas import tpu as pltpu


def _masked_mse_kernel(preds_ref, targets_ref, mask_ref, sum_ref, cnt_ref):
    # preds_ref / targets_ref : (Bt, C, Tl)   native dtype, VMEM
    # mask_ref                : (Bt, 1, Tl)   native dtype, VMEM
    # sum_ref                 : (1, 1, 8, 128) f32  per-(i,j) partial sum
    # cnt_ref                 : (1, 1, 8, 128) i32  per-(i,j) nonzero count
    d = preds_ref[...].astype(jnp.float32) - targets_ref[...].astype(jnp.float32)
    sq = d * d                                      # (Bt, C, Tl)

    # Reduce over channels first (XLU), then apply the mask once per pixel
    # instead of broadcasting the mask over every channel.
    per_pix = jnp.sum(sq, axis=1, keepdims=True)    # (Bt, 1, Tl)
    m = mask_ref[...].astype(jnp.float32)           # (Bt, 1, Tl)

    s = jnp.sum(per_pix * m)                        # f32 scalar partial
    c = jnp.sum((m != 0.0).astype(jnp.int32))       # exact i32 partial count

    # Broadcast partials across a full (8, 128) tile -> unmasked lane-dense store.
    sum_ref[...] = jnp.broadcast_to(s, sum_ref.shape)
    cnt_ref[...] = jnp.broadcast_to(c, cnt_ref.shape)


def _largest_divisor_leq(n, cap):
    """Largest divisor of n that is <= cap (>= 1)."""
    cap = int(max(1, min(n, cap)))
    for d in range(cap, 0, -1):
        if n % d == 0:
            return d
    return 1


def masked_mse_loss(preds, targets, mask):
    """preds, targets: [B, C, H, W] (f32/bf16); mask: [B, H, W] (any dtype, 0 == masked)."""
    assert preds.shape == targets.shape
    B, C, H, W = preds.shape
    HW = H * W

    # Free reshapes (contiguous); keep preds/targets/mask in their native dtypes.
    p = preds.reshape(B, C, HW)
    t = targets.reshape(B, C, HW)
    m = mask.reshape(B, 1, HW)
    if m.dtype == jnp.bool_:
        m = m.astype(jnp.int8)   # 1-byte, avoids 1-bit layout corner cases

    # Zero-pad HW to a multiple of 128 (exact for this loss: zero diff, zero mask).
    HW_pad = -(-HW // 128) * 128
    if HW_pad != HW:
        pad = HW_pad - HW
        p = jnp.pad(p, ((0, 0), (0, 0), (0, pad)))
        t = jnp.pad(t, ((0, 0), (0, 0), (0, pad)))
        m = jnp.pad(m, ((0, 0), (0, 0), (0, pad)))

    # ---- tile selection -----------------------------------------------------
    itemsize = jnp.dtype(preds.dtype).itemsize
    c_pad = -(-C // 8) * 8                      # sublane padding of the C axis
    budget_bytes = 4 * 1024 * 1024              # per input block (see vmem_limit below)

    # Small Bt first (long contiguous Tl runs, more B blocks for megacore),
    # bounded by the budget so a huge C can never blow VMEM.
    bt_cap = max(1, budget_bytes // (c_pad * 128 * itemsize))
    Bt = _largest_divisor_leq(B, min(8, bt_cap))

    # Spend the remaining budget on Tl (a multiple of 128 dividing HW_pad).
    lanes = HW_pad // 128
    max_dl = max(1, budget_bytes // (Bt * c_pad * 128 * itemsize))
    Tl = 128 * _largest_divisor_leq(lanes, max_dl)

    nB, nHW = B // Bt, HW_pad // Tl

    # v7x megacore: guarantee >= 2 program instances on the ("parallel","parallel")
    # grid whenever there is enough data to split (no-op on 1-TC v5e/v6e).
    if nB * nHW == 1:
        if lanes >= 2:
            Tl = 128 * _largest_divisor_leq(lanes, lanes // 2)
            nHW = HW_pad // Tl
        elif B >= 2:
            Bt = _largest_divisor_leq(B, B // 2)
            nB = B // Bt

    sums, counts = pl.pallas_call(
        _masked_mse_kernel,
        out_shape=(
            jax.ShapeDtypeStruct((nB, nHW, 8, 128), jnp.float32),
            jax.ShapeDtypeStruct((nB, nHW, 8, 128), jnp.int32),
        ),
        grid_spec=pltpu.PrefetchScalarGridSpec(
            num_scalar_prefetch=0,
            grid=(nB, nHW),
            in_specs=[
                pl.BlockSpec((Bt, C, Tl), lambda i, j: (i, 0, j)),
                pl.BlockSpec((Bt, C, Tl), lambda i, j: (i, 0, j)),
                pl.BlockSpec((Bt, 1, Tl), lambda i, j: (i, 0, j)),
            ],
            out_specs=[
                pl.BlockSpec((1, 1, 8, 128), lambda i, j: (i, j, 0, 0)),
                pl.BlockSpec((1, 1, 8, 128), lambda i, j: (i, j, 0, 0)),
            ],
        ),
        compiler_params=pltpu.CompilerParams(
            # Independent output blocks per (i, j) -> both axes are true
            # data-parallel; v7x's two TensorCores can split either one.
            dimension_semantics=("parallel", "parallel"),
            # 2 inputs x 2 pipeline buffers x <=4 MiB (+ mask + tiny outputs)
            # ~= 16-17 MiB; 28 MiB clears v5e's 16 MiB default scoped VMEM and
            # stays well inside v7x's 64 MiB physical VMEM.
            vmem_limit_bytes=28 * 1024 * 1024,
        ),
    )(p, t, m)

    # Tiny cross-block combine (XLA), then the masked mean:
    #   sum(loss * mask_expanded) / count_nonzero(mask)
    total_sum = jnp.sum(sums[:, :, 0, 0])
    total_cnt = jnp.sum(counts[:, :, 0, 0])          # exact integer count
    return total_sum / total_cnt


def _reference(preds, targets, mask):
    loss = (preds - targets) ** 2                 # [B, C, H, W]
    m_exp = mask[:, None, :, :]                   # unsqueeze(1).expand_as(loss)
    num_attempt = jnp.sum(mask != 0)
    return jnp.sum(loss * m_exp) / num_attempt


if __name__ == "__main__":
    key = jax.random.PRNGKey(0)
    k1, k2, k3 = jax.random.split(key, 3)

    B, C, H, W = 2, 4, 16, 16
    preds = jax.random.normal(k1, (B, C, H, W), dtype=jnp.float32)
    targets = jax.random.normal(k2, (B, C, H, W), dtype=jnp.float32)
    # Binary mask with some zeros (at least one nonzero with this seed).
    mask = (jax.random.uniform(k3, (B, H, W)) > 0.3).astype(jnp.float32)

    out = masked_mse_loss(preds, targets, mask)
    out = jax.block_until_ready(out)

    ref = _reference(preds, targets, mask)
    assert jnp.allclose(out, ref, rtol=1e-5, atol=1e-5), (out, ref)

    print("KERNEL_OK")
</pallas_src>

<mosaic_0001>
module attributes {stable_mosaic.version = 11 : i64} {
  func.func @_masked_mse_kernel(%arg0: i32, %arg1: i32, %arg2: memref<2x4x128xf32, #tpu.memory_space<vmem>>, %arg3: memref<2x4x128xf32, #tpu.memory_space<vmem>>, %arg4: memref<2x1x128xf32, #tpu.memory_space<vmem>>, %arg5: memref<1x1x8x128xf32, #tpu.memory_space<vmem>>, %arg6: memref<1x1x8x128xi32, #tpu.memory_space<vmem>>) attributes {dimension_semantics = [#tpu.dimension_semantics<parallel>, #tpu.dimension_semantics<parallel>], iteration_bounds = array<i64: 1, 2>, scalar_prefetch = 0 : i64, scratch_operands = 0 : i64, tpu.core_type = #tpu.core_type<tc>, window_params = [{transform_indices = @transform_0, window_bounds = array<i64: 2, 4, 128>}, {transform_indices = @transform_1, window_bounds = array<i64: 2, 4, 128>}, {transform_indices = @transform_2, window_bounds = array<i64: 2, 1, 128>}, {transform_indices = @transform_3, window_bounds = array<i64: 1, 1, 8, 128>}, {transform_indices = @transform_4, window_bounds = array<i64: 1, 1, 8, 128>}]} {
    %c0 = arith.constant 0 : index
    %c0_0 = arith.constant 0 : index
    %c0_1 = arith.constant 0 : index
    %0 = vector.load %arg2[%c0, %c0_0, %c0_1] : memref<2x4x128xf32, #tpu.memory_space<vmem>>, vector<2x4x128xf32>
    %c0_2 = arith.constant 0 : index
    %c0_3 = arith.constant 0 : index
    %c0_4 = arith.constant 0 : index
    %1 = vector.load %arg3[%c0_2, %c0_3, %c0_4] : memref<2x4x128xf32, #tpu.memory_space<vmem>>, vector<2x4x128xf32>
    %2 = arith.subf %0, %1 : vector<2x4x128xf32>
    %3 = arith.mulf %2, %2 : vector<2x4x128xf32>
    %cst = arith.constant dense<0.000000e+00> : vector<2x128xf32>
    %4 = vector.multi_reduction <add>, %3, %cst [1] : vector<2x4x128xf32> to vector<2x128xf32>
    %5 = vector.shape_cast %4 : vector<2x128xf32> to vector<2x1x128xf32>
    %c0_5 = arith.constant 0 : index
    %c0_6 = arith.constant 0 : index
    %c0_7 = arith.constant 0 : index
    %6 = vector.load %arg4[%c0_5, %c0_6, %c0_7] : memref<2x1x128xf32, #tpu.memory_space<vmem>>, vector<2x1x128xf32>
    %7 = arith.mulf %5, %6 : vector<2x1x128xf32>
    %8 = vector.shape_cast %7 : vector<2x1x128xf32> to vector<1x2x1x128xf32>
    %cst_8 = arith.constant dense<0.000000e+00> : vector<1xf32>
    %9 = vector.multi_reduction <add>, %8, %cst_8 [1, 2, 3] : vector<1x2x1x128xf32> to vector<1xf32>
    %10 = vector.shape_cast %9 : vector<1xf32> to vector<1x1x1x1xf32>
    %11 = vector.extract %10[0, 0, 0, 0] : f32 from vector<1x1x1x1xf32>
    %cst_9 = arith.constant 0.000000e+00 : f32
    %12 = vector.broadcast %cst_9 : f32 to vector<2x1x128xf32>
    %13 = arith.cmpf one, %6, %12 : vector<2x1x128xf32>
    %14 = arith.extui %13 : vector<2x1x128xi1> to vector<2x1x128xi32>
    %15 = vector.shape_cast %14 : vector<2x1x128xi32> to vector<1x2x1x128xi32>
    %cst_10 = arith.constant dense<0> : vector<1xi32>
    %16 = vector.multi_reduction <add>, %15, %cst_10 [1, 2, 3] : vector<1x2x1x128xi32> to vector<1xi32>
    %17 = vector.shape_cast %16 : vector<1xi32> to vector<1x1x1x1xi32>
    %18 = vector.extract %17[0, 0, 0, 0] : i32 from vector<1x1x1x1xi32>
    %19 = vector.broadcast %11 : f32 to vector<1x1x8x128xf32>
    %c0_11 = arith.constant 0 : index
    %c0_12 = arith.constant 0 : index
    %c0_13 = arith.constant 0 : index
    %c0_14 = arith.constant 0 : index
    %20 = vector.load %arg5[%c0_11, %c0_12, %c0_13, %c0_14] : memref<1x1x8x128xf32, #tpu.memory_space<vmem>>, vector<1x1x8x128xf32>
    tpu.vector_store %arg5[%c0_11, %c0_12, %c0_13, %c0_14], %19 {strides = array<i32>} : memref<1x1x8x128xf32, #tpu.memory_space<vmem>>, vector<1x1x8x128xf32>,
    %21 = vector.broadcast %18 : i32 to vector<1x1x8x128xi32>
    %c0_15 = arith.constant 0 : index
    %c0_16 = arith.constant 0 : index
    %c0_17 = arith.constant 0 : index
    %c0_18 = arith.constant 0 : index
    %22 = vector.load %arg6[%c0_15, %c0_16, %c0_17, %c0_18] : memref<1x1x8x128xi32, #tpu.memory_space<vmem>>, vector<1x1x8x128xi32>
    tpu.vector_store %arg6[%c0_15, %c0_16, %c0_17, %c0_18], %21 {strides = array<i32>} : memref<1x1x8x128xi32, #tpu.memory_space<vmem>>, vector<1x1x8x128xi32>,
    return
  }
  func.func @transform_0(%arg0: i32, %arg1: i32) -> (i32, i32, i32) {
    %c0_i32 = arith.constant 0 : i32
    %c0_i32_0 = arith.constant 0 : i32
    return %arg0, %c0_i32, %arg1 : i32, i32, i32
  }
  func.func @transform_1(%arg0: i32, %arg1: i32) -> (i32, i32, i32) {
    %c0_i32 = arith.constant 0 : i32
    %c0_i32_0 = arith.constant 0 : i32
    return %arg0, %c0_i32, %arg1 : i32, i32, i32
  }
  func.func @transform_2(%arg0: i32, %arg1: i32) -> (i32, i32, i32) {
    %c0_i32 = arith.constant 0 : i32
    %c0_i32_0 = arith.constant 0 : i32
    return %arg0, %c0_i32, %arg1 : i32, i32, i32
  }
  func.func @transform_3(%arg0: i32, %arg1: i32) -> (i32, i32, i32, i32) {
    %c0_i32 = arith.constant 0 : i32
    %c0_i32_0 = arith.constant 0 : i32
    %c0_i32_1 = arith.constant 0 : i32
    return %arg0, %arg1, %c0_i32, %c0_i32_0 : i32, i32, i32, i32
  }
  func.func @transform_4(%arg0: i32, %arg1: i32) -> (i32, i32, i32, i32) {
    %c0_i32 = arith.constant 0 : i32
    %c0_i32_0 = arith.constant 0 : i32
    %c0_i32_1 = arith.constant 0 : i32
    return %arg0, %arg1, %c0_i32, %c0_i32_0 : i32, i32, i32, i32
  }
}

</mosaic_0001>

<bundles_post_ra>
// kernel: tpu_custom_call.1
= control target key start
LH: loop header
LB: loop body
LE: loop exit
PB: predicated region body
PF: predicated region fallthrough
CT: control target
= control target key end

     0   :  { %s1185_s0 = inlined_call_operand.hbm [shape: f32[2,4,256], index: 0, kind: input, shape index: {}]   ;;  %s1186_s1 = inlined_call_operand.hbm [shape: f32[2,4,256], index: 1, kind: input, shape index: {}]   ;;  %s1187_s2 = inlined_call_operand.vmem [shape: f32[2,1,256], index: 2, kind: input, shape index: {}]   ;;  %s1188_s3 = inlined_call_operand.hbm [shape: f32[1,2,8,128], index: 3, kind: output, shape index: {0}]   ;;  %s1189_s4 = inlined_call_operand.hbm [shape: s32[1,2,8,128], index: 4, kind: output, shape index: {1}]  }
   0x1   :  { %1193 = sst [smem:[#allocation16_spill]] %s1185_s0 }
   0x2   :  { %10 = vsyncpa [#allocation3], 0 }
   0x3   :  { %12 = vsyncpa [#allocation3 + $0x1], 0 }
   0x4   :  { %13 = vsyncpa [#allocation6], 0 }
   0x5   :  { %15 = vsyncpa [#allocation6 + $0x1], 0 }
   0x6   :  { %16 = vsyncpa [#allocation4], 0 }
   0x7   :  { %18 = vsyncpa [#allocation4 + $0x1], 0 }
   0x8   :  { %19 = vsyncpa [#allocation10], 0 }
   0x9   :  { %21 = vsyncpa [#allocation10 + $0x1], 0  ;;  %s923_s15 = smov 0   ;;  %s925_s16 = smov 0  }
   0xa   :  { %s927_s17 = smov 0   ;;  %s929_s18 = smov 0  }
   0xb   :  { %s931_s19 = smov 0   ;;  %s933_s20 = smov 0  }
   0xc LB: > { %s621_s21 = sadd.s32 4294967295, %s888_s20   ;;  %s622_s22 = sadd.s32 4294967294, %s888_s20   ;;  %s888_s20 = sphi %s933_s20, %s27_s20   ;;  %s884_s19 = sphi %s931_s19, %s1208_s19   ;;  %s880_s18 = sphi %s929_s18, %s1207_s18   ;;  %s876_s17 = sphi %s927_s17, %s1206_s17   ;;  %s872_s16 = sphi %s925_s16, %s1205_s16   ;;  %s868_s15 = sphi %s923_s15, %s1204_s15  }
   0xd   : > { %s36_s23 = sadd.s32 1, %s884_s19  ;;  %s48_s24 = sadd.s32 1, %s876_s17 }
   0xe   : > { %p37_p0 = scmp.ge.s32.totalorder %s36_s23, 2  ;;  %p55_p1 = scmp.ne.s32.totalorder %s876_s17, %s872_s16 }
   0xf   : > { %p56_p2 = scmp.eq.s32.totalorder %s888_s20, 0  ;;  %p61_p3 = scmp.ne.s32.totalorder %s872_s16, %s868_s15 }
  0x10   : > { %s1210_s23 = smov (%p37_p0, %s36_s23), 0  ;;  %p62_p5 = scmp.eq.s32.totalorder %s621_s21, 0 }
  0x11   : > { %1194 = sst [smem:[#allocation15_spill]] %s1210_s23  ;;  %p964_p4 = por %p56_p2, %p55_p1 }
  0x12   : > { %s44_s26 = ssub.s32 %s884_s19, %s1210_s23  ;;  %p143_p6 = scmp.eq.s32.totalorder %s621_s21, 1 }
  0x13   : > { %p46_p7 = scmp.eq.s32.totalorder %s44_s26, 0  ;;  %p970_p8 = por %p62_p5, %p61_p3 }
  0x14   : > { %p974_p9 = por %p143_p6, %p55_p1  ;;  %p149_p10 = scmp.eq.s32.totalorder %s622_s22, 1 }
  0x15   : > { %s979_s29 = scalar_select %p46_p7, %s876_s17, %s48_s24  }
  0x16   : > { %s1197_s28 = scalar_select %p974_p9, 1, 0 }
  0x17   : > { %p981_p11 = por %p149_p10, %p61_p3  ;;  %p1190_p12 = scmp.ge.s32.totalorder %s888_s20, 2 }
  0x18   : > { %s989_s5 = sand.u32 (!%p1190_p12), 1, %s876_s17   ;;  %s626_s6 = sshll.u32 (!%p1190_p12), %s884_s19, 6 }
  0x19   : > { %s1198_s30 = scalar_select %p981_p11, 1, 0 }
  0x1a   : > { %193 = sbr.rel (%p1190_p12) target bundleno = 87 (0x57), region = 16  ;;  %s625_s7 = sshll.u32 (!%p1190_p12), %s989_s5, 3 }
  0x1b   : > { %s1199_s0 = sld [smem:[#allocation16_spill]] (!%p1190_p12)  ;;  %s201_s11 = scalar_lea.vmem (!%p1190_p12), [#allocation2], %s625_s7 }
  0x1c   : > { %s210_s12 = sshll.u32 (!%p1190_p12), %s201_s11, 4  ;;  %s198_s13 = scalar_lea.sflag (!%p1190_p12), [#allocation3], %s989_s5  ;;  %s1002_s12 = int_to_ptr.vmem [resolvable:$true] %s210_s12 }
  0x21   : > { %s998_s10 = scalar_lea.hbm %s1199_s0, %s626_s6  ;;  %s718_s24 = scalar_lea.hbm %s1199_s0, 256 }
  0x22   : > { %s714_s14 = scalar_lea.hbm %s998_s10, 128  ;;  %p719_p2 = scmp.lt.u32.totalorder %s998_s10, %s1199_s0 }
  0x23   : > { %p715_p13 = scmp.ne.s32.totalorder %s998_s10, %s714_s14  ;;  %p720_p3 = scmp.lt.u32.totalorder %s718_s24, %s714_s14 }
  0x24   : > { %p722_p6 = scmp.lt.u32.totalorder %s714_s14, %s998_s10 }
  0x25   : > { %p716_p0 = pnand %p715_p13, %p964_p4  ;;  %p721_p5 = por %p720_p3, %p719_p2 }
  0x27   : > { %p717_p1 = pneg %p716_p0  ;;  %p723_p7 = por %p722_p6, %p721_p5 }
  0x29   : > { %p724_p10 = pnand %p723_p7, %p717_p1 }
  0x2b   : > { %727 = shalt.err (!%p724_p10)
}
  0x2c   : > { %s728_s9 = scalar_lea.vmem %s1002_s12, 128  ;;  %s890_s11 = smov [#allocation2]  }
  0x2d   : > { %p729_p13 = scmp.ne.s32.totalorder %s1002_s12, %s728_s9  ;;  %s732_s21 = sshll.u32 %s890_s11, 4  ;;  %s733_s21 = int_to_ptr.vmem [resolvable:$false] %s732_s21 }
  0x2e   : > { %s734_s22 = scalar_lea.vmem %s733_s21, 256  ;;  %p735_p11 = scmp.lt.s32.totalorder %s1002_s12, %s733_s21 }
  0x2f   : > { %p730_p0 = pnand %p729_p13, %p964_p4  ;;  %p736_p9 = scmp.lt.s32.totalorder %s734_s22, %s728_s9 }
  0x31   : > { %p731_p12 = pneg %p730_p0  ;;  %p737_p2 = por %p736_p9, %p735_p11 }
  0x33   : > { %p738_p3 = pnand %p737_p2, %p731_p12 }
  0x35   : > { %741 = shalt.err (!%p738_p3)
}
  0x36   : > { %s891_s14 = smov 128   ;;  %s892_s24 = smov 64  }
  0x37   : > { %s893_s26 = smov 4   ;;  %s1036_s11 = scalar_lea.hbm %s1186_s1, %s626_s6 }
  0x38   : > { %646 = dma.hbm_to_vmem [thread:$0]  (%p964_p4), %s998_s10, 128, %s1002_s12, %s198_s13, %s891_s14, %s892_s24, %s893_s26  }
  0x39   : > { %s224_s21 = scalar_lea.vmem [#allocation5], %s625_s7  ;;  %s221_s0 = scalar_lea.sflag [#allocation6], %s989_s5 }
  0x3a   : > { %s233_s22 = sshll.u32 %s224_s21, 4  ;;  %s742_s23 = scalar_lea.hbm %s1036_s11, 128  ;;  %s1040_s22 = int_to_ptr.vmem [resolvable:$true] %s233_s22 }
  0x3b   : > { %p743_p9 = scmp.ne.s32.totalorder %s1036_s11, %s742_s23  ;;  %s746_s6 = scalar_lea.hbm %s1186_s1, 256 }
  0x3c   : > { %p747_p1 = scmp.lt.u32.totalorder %s1036_s11, %s1186_s1  ;;  %p748_p5 = scmp.lt.u32.totalorder %s746_s6, %s742_s23 }
  0x3d   : > { %p744_p11 = pnand %p743_p9, %p964_p4  ;;  %p750_p7 = scmp.lt.u32.totalorder %s742_s23, %s1036_s11 }
  0x3e   : > { %p749_p6 = por %p748_p5, %p747_p1 }
  0x3f   : > { %p745_p12 = pneg %p744_p11 }
  0x40   : > { %p751_p10 = por %p750_p7, %p749_p6 }
  0x42   : > { %p752_p13 = pnand %p751_p10, %p745_p12 }
  0x44   : > { %755 = shalt.err (!%p752_p13)
}
  0x45   : > { %s756_s7 = scalar_lea.vmem %s1040_s22, 128  ;;  %s894_s9 = smov [#allocation5]  }
  0x46   : > { %p757_p0 = scmp.ne.s32.totalorder %s1040_s22, %s756_s7  ;;  %s760_s21 = sshll.u32 %s894_s9, 4  ;;  %s761_s21 = int_to_ptr.vmem [resolvable:$false] %s760_s21 }
  0x47   : > { %s762_s10 = scalar_lea.vmem %s761_s21, 256  ;;  %p763_p9 = scmp.lt.s32.totalorder %s1040_s22, %s761_s21 }
  0x48   : > { %p758_p2 = pnand %p757_p0, %p964_p4  ;;  %p764_p11 = scmp.lt.s32.totalorder %s762_s10, %s756_s7 }
  0x4a   : > { %p759_p3 = pneg %p758_p2  ;;  %p765_p1 = por %p764_p11, %p763_p9 }
  0x4c   : > { %p766_p5 = pnand %p765_p1, %p759_p3 }
  0x4e   : > { %769 = shalt.err (!%p766_p5)
}
  0x4f   : > { %647 = dma.hbm_to_vmem [thread:$0]  (%p964_p4), %s1036_s11, 128, %s1040_s22, %s221_s0, %s891_s14, %s892_s24, %s893_s26  }
  0x50   : > { %242 = sbr.rel (!%p964_p4) target bundleno = 87 (0x57), region = 28  ;;  %s629_s23 = sshll.u32 (%p964_p4), %s989_s5, 1 }
  0x51   : > { %s250_s13 = scalar_lea.vmem (%p964_p4), %s1187_s2, %s884_s19  ;;  %s246_s8 = scalar_lea.vmem (%p964_p4), [#allocation7], %s629_s23 }
  0x52   : > { %v266_v0 = vld [vmem:[%s250_s13] sm:$0x1] (%p964_p4)  ;;  %v268_v1 = vld [vmem:[%s250_s13 + $0x2] sm:$0x1] (%p964_p4) }
  0x53   : > { %267 = vst [vmem:[%s246_s8] sm:$0x1] (%p964_p4), %v266_v0  ;;  %269 = vst [vmem:[%s246_s8 + $0x1] sm:$0x1] (%p964_p4), %v268_v1 }
  0x57 PF: > { %p630_p12 = scmp.ge.s32.totalorder %s888_s20, 1  ;;  %p287_p6 = scmp.lt.s32.totalorder %s888_s20, 3 }
  0x59   : > { %p288_p7 = pnand %p630_p12, %p287_p6 }
  0x5a   : > { %s1079_s0 = sand.u32 (!%p288_p7), 1, %s872_s16  }
  0x5b   : > { %291 = sbr.rel (%p288_p7) target bundleno = 369 (0x171), region = 62  ;;  %s1082_s25 = sshll.u32 (!%p288_p7), %s1079_s0, 3 }
  0x5c   : > { %s294_s5 = scalar_lea.sflag (!%p288_p7), [#allocation3], %s1079_s0  ;;  %s297_s14 = scalar_lea.vmem (!%p288_p7), [#allocation2], %s1082_s25 }
  0x62   : > { %851 = dma.done.wait (%p970_p8), %s294_s5, 128  }
  0x63   : > { %853 = vsyncadd (%p970_p8), %s294_s5, 4294967168  ;;  %s303_s24 = scalar_lea.sflag [#allocation6], %s1079_s0  ;;  %s306_s26 = scalar_lea.vmem [#allocation5], %s1082_s25 }
  0x64   : > { %855 = dma.done.wait (%p970_p8), %s303_s24, 128  }
  0x65   : > { %857 = vsyncadd (%p970_p8), %s303_s24, 4294967168  ;;  %s633_s11 = sshll.u32 %s1079_s0, 1  ;;  %vm382_vm0 = vcmask 1040384   ;;  %v355_v4 = vld [vmem:[%s297_s14] sm:$0xf]  ;;  %v895_v7 = vmov 0  }
  0x66   : > { %s314_s22 = scalar_lea.vmem [#allocation7], %s633_s11  ;;  %v356_v5 = vld [vmem:[%s297_s14 + $0x4] sm:$0xf]  ;;  %v357_v6 = vld [vmem:[%s306_s26] sm:$0xf]  ;;  %vm363_vm3 = vcmask 1043456  }
  0x67   : > { %v378_v2 = vld [vmem:[%s314_s22] sm:$0x1]  ;;  %v379_v3 = vld [vmem:[%s314_s22 + $0x1] sm:$0x1]  ;;  %v358_v10 = vld [vmem:[%s306_s26 + $0x4] sm:$0xf]  ;;  %v359_v11 = vsub.f32 %v355_v4, %v357_v6 }
  0x68   : > { %vm395_vm1 = vcmp.ne.f32.partialorder %v378_v2, 0.0  ;;  %vm396_vm2 = vcmp.ne.f32.partialorder %v379_v3, 0.0  ;;  %v360_v14 = vsub.f32 %v356_v5, %v358_v10  ;;  %s351_s27 = scalar_lea.vmem [#allocation9], %s1082_s25  ;;  %s638_s9 = sshll.u32 %s880_s18, 7 }
  0x69   : > { %v397_v8 = vsel %vm395_vm1, 1, %v895_v7  ;;  %v398_v9 = vsel %vm396_vm2, 1, %v895_v7  ;;  %v361_v16 = vmul.f32 %v359_v11, %v359_v11  ;;  %s461_s7 = sshll.u32 %s351_s27, 4  ;;  %s344_s21 = scalar_lea.vmem [#allocation8], %s1082_s25  ;;  %s1104_s7 = int_to_ptr.vmem [resolvable:$true] %s461_s7 }
  0x6a   : > { %v399_v12 = vsel %vm382_vm0, %v397_v8, 0  ;;  %v400_v13 = vsel %vm382_vm0, %v398_v9, 0  ;;  %v362_v17 = vmul.f32 %v360_v14, %v360_v14  ;;  %s446_s10 = sshll.u32 %s344_s21, 4  ;;  %s1109_s6 = scalar_lea.hbm %s1188_s3, %s638_s9  ;;  %s1111_s10 = int_to_ptr.vmem [resolvable:$true] %s446_s10 }
  0x6b   : > { %v401_v15 = vadd.s32 %v400_v13, %v399_v12  ;;  %v364_v20 = vsel %vm363_vm3, %v361_v16, 0.0  ;;  %s1116_s25 = scalar_lea.hbm %s1189_s4, %s638_s9  ;;  %s426_s14 = scalar_lea.sflag [#allocation4], %s1079_s0 }
  0x6c   : > { %v365_v21 = vrot.slane %v364_v20, 4  ;;  %v371_v22 = vsel %vm363_vm3, %v362_v17, 0.0  ;;  %s770_s24 = scalar_lea.vmem %s1111_s10, 128  ;;  %p1200_p8 = scmp.ne.s32.totalorder %s1197_s28, 0 }
  0x6d   : > { %v403_v18 = vshrl.u32 %v401_v15, 16  ;;  %v402_v19 = vand.u32 65535, %v401_v15  ;;  %v372_v24 = vrot.slane %v371_v22, 4  ;;  %p771_p4 = scmp.ne.s32.totalorder %s1111_s10, %s770_s24  ;;  %s896_s26 = smov [#allocation8]  }
  0x6e   : > { %v366_v25 = vadd.f32 %v365_v21, %v364_v20  ;;  %s774_s11 = sshll.u32 %s896_s26, 4  ;;  %s775_s11 = int_to_ptr.vmem [resolvable:$false] %s774_s11 }
  0x6f   : > { %v405_v23 = vcvt.s32.f32 %v403_v18  ;;  %v404_v26 = vcvt.s32.f32 %v402_v19  ;;  %v373_v27 = vadd.f32 %v372_v24, %v371_v22  ;;  %p772_p10 = pnand %p771_p4, %p1200_p8  ;;  %s776_s22 = scalar_lea.vmem %s775_s11, 256 }
  0x70   : > { %v367_v28 = vrot.slane %v366_v25, 2  ;;  %p777_p0 = scmp.lt.s32.totalorder %s1111_s10, %s775_s11  ;;  %p778_p2 = scmp.lt.s32.totalorder %s776_s22, %s770_s24 }
  0x71   : > { %408 = vadd.xlane.f32.xlu0 %v405_v23  ;;  %v374_v29 = vrot.slane %v373_v27, 2  ;;  %p773_p13 = pneg %p772_p10 }
  0x72   : > { %v368_v30 = vadd.f32 %v367_v28, %v366_v25  ;;  %p779_p3 = por %p778_p2, %p777_p0 }
  0x73   : > { %v375_v31 = vadd.f32 %v374_v29, %v373_v27 }
  0x74   : > { %v369_v32 = vrot.slane %v368_v30, 1  ;;  %p780_p9 = pnand %p779_p3, %p773_p13 }
  0x75   : > { %406 = vadd.xlane.f32.xlu0 %v404_v26  ;;  %v376_v33 = vrot.slane %v375_v31, 1 }
  0x76   : > { %v370_v34 = vadd.f32 %v369_v32, %v368_v30 }
  0x77   : > { %v377_v35 = vadd.f32 %v376_v33, %v375_v31 }
  0x78   : > { %v380_v36 = vmul.f32 %v378_v2, %v370_v34 }
  0x79   : > { %v381_v37 = vmul.f32 %v379_v3, %v377_v35 }
  0x7a   : > { %v383_v38 = vsel %vm382_vm0, %v380_v36, 0.0 }
  0x7b   : > { %v384_v39 = vsel %vm382_vm0, %v381_v37, 0.0 }
  0x7c   : > { %v385_v40 = vadd.f32 %v384_v39, %v383_v38 }
  0x7e   : > { %386 = vadd.xlane.f32.xlu1 %v385_v40 }
  0xfe   : > { %v409_v41 = vpop.xlane.xlu0 %408 }
  0xff   : > { %v411_v42 = vcvt.f32.s32 %v409_v41 }
 0x101   : > { %v412_v43 = vshll.u32 %v411_v42, 16 }
 0x102   : > { %v407_v44 = vpop.xlane.xlu0 %406 }
 0x103   : > { %v410_v45 = vcvt.f32.s32 %v407_v44 }
 0x105   : > { %v413_v46 = vadd.s32 %v412_v43, %v410_v45 }
 0x107   : > { %v414_v47 = vrot.slane %v413_v46, 4 }
 0x109   : > { %v415_v48 = vadd.s32 %v414_v47, %v413_v46 }
 0x10b   : > { %v387_v49 = vpop.xlane.xlu1 %386  ;;  %v416_v50 = vrot.slane %v415_v48, 2 }
 0x10c   : > { %v388_v51 = vrot.slane %v387_v49, 4 }
 0x10d   : > { %v417_v53 = vadd.s32 %v416_v50, %v415_v48 }
 0x10e   : > { %v389_v52 = vadd.f32 %v388_v51, %v387_v49 }
 0x10f   : > { %v418_v56 = vrot.slane %v417_v53, 1 }
 0x110   : > { %v390_v54 = vrot.slane %v389_v52, 2 }
 0x111   : > { %v419_v59 = vadd.s32 %v418_v56, %v417_v53 }
 0x112   : > { %v391_v55 = vadd.f32 %v390_v54, %v389_v52 }
 0x114   : > { %v392_v57 = vrot.slane %v391_v55, 1 }
 0x116   : > { %v393_v58 = vadd.f32 %v392_v57, %v391_v55 }
 0x118   : > { %642 = vpush %v393_v58 }
 0x119   : > { %644 = vpush %v419_v59 }
 0x149   : > { %s643_s13 = spop %642 }
 0x14a   : > { %v421_v60 = vstv %s643_s13  ;;  %s645_s8 = spop %644 }
 0x14b   : > { %422 = vst [vmem:[%s344_s21] sm:$0xff] %v421_v60  ;;  %v423_v61 = vstv %s645_s8 }
 0x14c   : > { %424 = vst [vmem:[%s351_s27] sm:$0xff] %v423_v61 }
 0x14d   : > { %783 = shalt.err (!%p780_p9)
}
 0x14e   : > { %s784_s27 = scalar_lea.hbm %s1109_s6, 128  ;;  %s788_s23 = scalar_lea.hbm %s1188_s3, 256 }
 0x14f   : > { %p785_p11 = scmp.ne.s32.totalorder %s1109_s6, %s784_s27  ;;  %p789_p12 = scmp.lt.u32.totalorder %s1109_s6, %s1188_s3 }
 0x150   : > { %p790_p6 = scmp.lt.u32.totalorder %s788_s23, %s784_s27  ;;  %p792_p4 = scmp.lt.u32.totalorder %s784_s27, %s1109_s6 }
 0x151   : > { %p786_p1 = pnand %p785_p11, %p1200_p8 }
 0x152   : > { %p791_p7 = por %p790_p6, %p789_p12 }
 0x153   : > { %p787_p5 = pneg %p786_p1 }
 0x154   : > { %p793_p10 = por %p792_p4, %p791_p7 }
 0x156   : > { %p794_p13 = pnand %p793_p10, %p787_p5 }
 0x158   : > { %797 = shalt.err (!%p794_p13)
}
 0x159   : > { %650 = dma.vmem_to_hbm [thread:$0]  (%p1200_p8), %s1111_s10, 128, %s1109_s6, %s426_s14  }
 0x15a   : > { %s431_s8 = scalar_lea.sflag [#allocation10], %s1079_s0  ;;  %s798_s5 = scalar_lea.vmem %s1104_s7, 128 }
 0x15b   : > { %p799_p0 = scmp.ne.s32.totalorder %s1104_s7, %s798_s5  ;;  %s897_s18 = smov [#allocation9]  }
 0x15c   : > { %s802_s24 = sshll.u32 %s897_s18, 4  ;;  %s803_s24 = int_to_ptr.vmem [resolvable:$false] %s802_s24 }
 0x15d   : > { %p800_p2 = pnand %p799_p0, %p1200_p8  ;;  %s804_s26 = scalar_lea.vmem %s803_s24, 256 }
 0x15e   : > { %p805_p9 = scmp.lt.s32.totalorder %s1104_s7, %s803_s24  ;;  %p806_p11 = scmp.lt.s32.totalorder %s804_s26, %s798_s5 }
 0x15f   : > { %p801_p3 = pneg %p800_p2 }
 0x160   : > { %p807_p1 = por %p806_p11, %p805_p9 }
 0x162   : > { %p808_p5 = pnand %p807_p1, %p801_p3 }
 0x164   : > { %811 = shalt.err (!%p808_p5)
}
 0x165   : > { %s812_s0 = scalar_lea.hbm %s1116_s25, 128  ;;  %s816_s14 = scalar_lea.hbm %s1189_s4, 256 }
 0x166   : > { %p813_p12 = scmp.ne.s32.totalorder %s1116_s25, %s812_s0  ;;  %p817_p4 = scmp.lt.u32.totalorder %s1116_s25, %s1189_s4 }
 0x167   : > { %p818_p10 = scmp.lt.u32.totalorder %s816_s14, %s812_s0  ;;  %p820_p0 = scmp.lt.u32.totalorder %s812_s0, %s1116_s25 }
 0x168   : > { %p814_p6 = pnand %p813_p12, %p1200_p8 }
 0x169   : > { %p819_p13 = por %p818_p10, %p817_p4 }
 0x16a   : > { %p815_p7 = pneg %p814_p6 }
 0x16b   : > { %p821_p2 = por %p820_p0, %p819_p13 }
 0x16d   : > { %p822_p3 = pnand %p821_p2, %p815_p7 }
 0x16f   : > { %825 = shalt.err (!%p822_p3)
}
 0x170   : > { %651 = dma.vmem_to_hbm [thread:$0]  (%p1200_p8), %s1104_s7, 128, %s1116_s25, %s431_s8  }
 0x171 PF: > { %s473_s27 = sand.u32 1, %s868_s15   ;;  %p1201_p9 = scmp.ne.s32.totalorder %s1198_s30, 0 }
 0x172   : > { %p1202_p11 = scmp.ge.s32.totalorder %s888_s20, 2  ;;  %s474_s9 = scalar_lea.sflag [#allocation4], %s473_s27 }
 0x174   : > { %p655_p1 = pnand %p1202_p11, %p1201_p9 }
 0x176   : > { %859 = dma.done.wait (!%p655_p1), %s474_s9, 128  }
 0x177   : > { %861 = vsyncadd (!%p655_p1), %s474_s9, 4294967168  ;;  %s483_s21 = scalar_lea.sflag [#allocation10], %s473_s27 }
 0x178   : > { %863 = dma.done.wait (!%p655_p1), %s483_s21, 128  }
 0x179   : > { %865 = vsyncadd (!%p655_p1), %s483_s21, 4294967168  ;;  %s27_s20 = sadd.s32 1, %s888_s20   ;;  %s1203_s28 = sld [smem:[#allocation15_spill]] }
 0x17a   : > { %p24_p5 = scmp.ge.s32.totalorder %s27_s20, 4   ;;  %s1204_s15 = smov %s872_s16 }
 0x17b   : > { %s1205_s16 = smov %s876_s17  ;;  %s1206_s17 = smov %s979_s29 }
 0x17c   : > { %s1207_s18 = smov %s884_s19  ;;  %26 = sbr.rel (!%p24_p5) target bundleno = 12 (0xc), region = 149 }
 0x17f   : > { %s1208_s19 = smov %s1203_s28 }
 0x183   :  { %488 = vsyncpa [#allocation3], 1 }
 0x184   :  { %490 = vsyncpa [#allocation3 + $0x1], 1 }
 0x185   :  { %491 = vsyncpa [#allocation6], 1 }
 0x186   :  { %493 = vsyncpa [#allocation6 + $0x1], 1 }
 0x187   :  { %494 = vsyncpa [#allocation4], 1 }
 0x188   :  { %496 = vsyncpa [#allocation4 + $0x1], 1 }
 0x189   :  { %497 = vsyncpa [#allocation10], 1 }
 0x18a   :  { %499 = vsyncpa [#allocation10 + $0x1], 1 }

</bundles_post_ra>
